<compile_context>
chip_gen: v7x
topology: tpu7x:2x2x1
jax: 0.10.0
libtpu: 0.0.40
codegen_flags: <defaults>
</compile_context>

<pallas_src>
import jax
import jax.numpy as jnp
from jax import lax
from jax.experimental import pallas as pl
from jax.experimental.pallas import tpu as pltpu

LANE = 128
SUBLANE = 8
TARGET_BLOCK_BYTES = 4 * 1024 * 1024   # ~4 MiB input blocks
MAX_ACC_ROWS = 512                      # fixed 256 KiB f32 accumulator


def _round_up(x: int, m: int) -> int:
    return ((x + m - 1) // m) * m


def _make_kernel(m: int, row_tile: int, acc_rows: int, bps: int, needs_mask: bool):
    fold = row_tile // acc_rows

    def kernel(pred_ref, act_ref, out_ref, acc_ref):
        c = pl.program_id(0)   # parallel split (2 TCs on v7x)
        i = pl.program_id(1)   # reduction step within the split

        @pl.when(i == 0)
        def _():
            acc_ref[...] = jnp.zeros_like(acc_ref)

        p = pred_ref[...].astype(jnp.float32)
        a = act_ref[...].astype(jnp.float32)
        # pred[pred < 0] = 1e-6
        p = jnp.where(p < 0, jnp.float32(1e-6), p)
        d = jnp.log(p + 1.0) - jnp.log(a + 1.0)
        d2 = d * d

        if needs_mask:
            # Global row index of every element of this block; rows >= m are
            # padding / dead iterations -> select 0 (kills any NaN/Inf too).
            row0 = (c * bps + i) * row_tile
            gr = row0 + lax.broadcasted_iota(jnp.int32, (row_tile, LANE), 0)
            d2 = jnp.where(gr < m, d2, jnp.float32(0.0))

        # Fold the block into the fixed-size accumulator (pure VPU adds).
        if fold > 1:
            d2 = d2.reshape(fold, acc_rows, LANE).sum(axis=0)
        acc_ref[...] += d2

        @pl.when(i == bps - 1)
        def _():
            # Per-split (8,128) partial sum; final reduce + sqrt in wrapper.
            out_ref[...] = acc_ref[...].reshape(acc_rows // SUBLANE, SUBLANE, LANE).sum(axis=0)

    return kernel


def rmsle_loss(pred, actual):
    assert pred.shape == actual.shape
    total_n = pred.size
    itemsize = jnp.dtype(pred.dtype).itemsize
    # Packed-sublane multiple: 8 rows for 4-byte, 16 for 2-byte, 32 for 1-byte.
    sub_mult = SUBLANE * max(1, 4 // itemsize)

    p_flat = pred.reshape(-1)
    a_flat = actual.reshape(-1)

    pad = (-total_n) % LANE
    if pad:
        # Rare path; see TODO(synk) at top of file.
        p_flat = jnp.pad(p_flat, (0, pad))
        a_flat = jnp.pad(a_flat, (0, pad))

    m = (total_n + pad) // LANE
    p2 = p_flat.reshape(m, LANE)
    a2 = a_flat.reshape(m, LANE)

    # Fixed-size tile selection (no divisor search).
    target_rows = max(sub_mult, TARGET_BLOCK_BYTES // (LANE * itemsize))
    candidate = _round_up(m, sub_mult)
    if candidate > MAX_ACC_ROWS:
        candidate = _round_up(candidate, MAX_ACC_ROWS)
    row_tile = min(target_rows, candidate)
    acc_rows = min(row_tile, MAX_ACC_ROWS)
    assert row_tile % acc_rows == 0 and row_tile % sub_mult == 0

    nrb = pl.cdiv(m, row_tile)          # real row blocks
    nsplit = 2 if nrb >= 2 else 1       # 2-way split (both TCs on v7x)
    bps = pl.cdiv(nrb, nsplit)          # row blocks per split

    needs_mask = (m % row_tile != 0) or (nsplit * bps != nrb)

    def in_index(c, i):
        # Clamp so dead iterations never issue an out-of-bounds DMA; their
        # contribution is zeroed by the in-kernel row mask.
        return (jnp.minimum(c * bps + i, nrb - 1), 0)

    kernel = _make_kernel(m, row_tile, acc_rows, bps, needs_mask)

    partials = pl.pallas_call(
        kernel,
        out_shape=jax.ShapeDtypeStruct((nsplit * SUBLANE, LANE), jnp.float32),
        grid_spec=pltpu.PrefetchScalarGridSpec(
            num_scalar_prefetch=0,
            grid=(nsplit, bps),
            in_specs=[
                pl.BlockSpec((row_tile, LANE), in_index),
                pl.BlockSpec((row_tile, LANE), in_index),
            ],
            out_specs=pl.BlockSpec((SUBLANE, LANE), lambda c, i: (c, 0)),
            scratch_shapes=[pltpu.VMEM((acc_rows, LANE), jnp.float32)],
        ),
        compiler_params=pltpu.CompilerParams(
            dimension_semantics=("parallel", "arbitrary"),
            vmem_limit_bytes=32 * 1024 * 1024,
        ),
    )(p2, a2)

    # Tiny epilogue: combine per-split partials, mean over the TRUE N, sqrt.
    return jnp.sqrt(jnp.sum(partials) / jnp.float32(total_n))


def rmsle_ref(pred, actual):
    p = jnp.where(pred < 0, 1e-6, pred)
    return jnp.sqrt(jnp.mean((jnp.log(p + 1.0) - jnp.log(actual + 1.0)) ** 2))


if __name__ == "__main__":
    key = jax.random.PRNGKey(0)
    k1, k2 = jax.random.split(key)
    shape = (2, 4, 16, 16)  # NCHW-style example input
    # pred includes negatives to exercise the clamp; actual is non-negative
    # (negative `actual` gives NaN, matching the PyTorch reference semantics).
    pred = jax.random.normal(k1, shape, dtype=jnp.float32)
    actual = jax.random.uniform(k2, shape, dtype=jnp.float32, minval=0.0, maxval=5.0)

    loss = rmsle_loss(pred, actual)
    jax.block_until_ready(loss)

    ref = rmsle_ref(pred, actual)
    assert jnp.allclose(loss, ref, rtol=1e-5, atol=1e-6), (loss, ref)
    print("KERNEL_OK")
</pallas_src>

<mosaic_0001>
module attributes {stable_mosaic.version = 11 : i64} {
  func.func @kernel(%arg0: i32, %arg1: i32, %arg2: memref<16x128xf32, #tpu.memory_space<vmem>>, %arg3: memref<16x128xf32, #tpu.memory_space<vmem>>, %arg4: memref<8x128xf32, #tpu.memory_space<vmem>>, %arg5: memref<16x128xf32, #tpu.memory_space<vmem>>) attributes {dimension_semantics = [#tpu.dimension_semantics<parallel>, #tpu.dimension_semantics<arbitrary>], iteration_bounds = array<i64: 1, 1>, scalar_prefetch = 0 : i64, scratch_operands = 1 : i64, tpu.core_type = #tpu.core_type<tc>, window_params = [{transform_indices = @transform_0, window_bounds = array<i64: 16, 128>}, {transform_indices = @transform_1, window_bounds = array<i64: 16, 128>}, {transform_indices = @transform_2, window_bounds = array<i64: 8, 128>}]} {
    %c0_i32 = arith.constant 0 : i32
    %0 = arith.cmpi eq, %arg1, %c0_i32 : i32
    %1 = arith.extui %0 : i1 to i32
    %c0_i32_0 = arith.constant 0 : i32
    %2 = arith.cmpi ne, %1, %c0_i32_0 : i32
    scf.if %2 {
      %cst_13 = arith.constant 0.000000e+00 : f32
      %23 = vector.broadcast %cst_13 : f32 to vector<16x128xf32>
      %c0_14 = arith.constant 0 : index
      %c0_15 = arith.constant 0 : index
      %24 = vector.load %arg5[%c0_14, %c0_15] : memref<16x128xf32, #tpu.memory_space<vmem>>, vector<16x128xf32>
      tpu.vector_store %arg5[%c0_14, %c0_15], %23 {strides = array<i32>} : memref<16x128xf32, #tpu.memory_space<vmem>>, vector<16x128xf32>,
    } else {
    }
    %c0 = arith.constant 0 : index
    %c0_1 = arith.constant 0 : index
    %3 = vector.load %arg2[%c0, %c0_1] : memref<16x128xf32, #tpu.memory_space<vmem>>, vector<16x128xf32>
    %c0_2 = arith.constant 0 : index
    %c0_3 = arith.constant 0 : index
    %4 = vector.load %arg3[%c0_2, %c0_3] : memref<16x128xf32, #tpu.memory_space<vmem>>, vector<16x128xf32>
    %cst = arith.constant 0.000000e+00 : f32
    %5 = vector.broadcast %cst : f32 to vector<16x128xf32>
    %6 = arith.cmpf olt, %3, %5 : vector<16x128xf32>
    %cst_4 = arith.constant 9.99999997E-7 : f32
    %7 = vector.broadcast %cst_4 : f32 to vector<16x128xf32>
    %8 = arith.select %6, %7, %3 : vector<16x128xi1>, vector<16x128xf32>
    %cst_5 = arith.constant 1.000000e+00 : f32
    %9 = vector.broadcast %cst_5 : f32 to vector<16x128xf32>
    %10 = arith.addf %8, %9 : vector<16x128xf32>
    %11 = math.log %10 : vector<16x128xf32>
    %cst_6 = arith.constant 1.000000e+00 : f32
    %12 = vector.broadcast %cst_6 : f32 to vector<16x128xf32>
    %13 = arith.addf %4, %12 : vector<16x128xf32>
    %14 = math.log %13 : vector<16x128xf32>
    %15 = arith.subf %11, %14 : vector<16x128xf32>
    %16 = arith.mulf %15, %15 : vector<16x128xf32>
    %c0_7 = arith.constant 0 : index
    %c0_8 = arith.constant 0 : index
    %17 = vector.load %arg5[%c0_7, %c0_8] : memref<16x128xf32, #tpu.memory_space<vmem>>, vector<16x128xf32>
    %18 = arith.addf %17, %16 : vector<16x128xf32>
    %c0_9 = arith.constant 0 : index
    %c0_10 = arith.constant 0 : index
    %19 = vector.load %arg5[%c0_9, %c0_10] : memref<16x128xf32, #tpu.memory_space<vmem>>, vector<16x128xf32>
    tpu.vector_store %arg5[%c0_9, %c0_10], %18 {strides = array<i32>} : memref<16x128xf32, #tpu.memory_space<vmem>>, vector<16x128xf32>,
    %c0_i32_11 = arith.constant 0 : i32
    %20 = arith.cmpi eq, %arg1, %c0_i32_11 : i32
    %21 = arith.extui %20 : i1 to i32
    %c0_i32_12 = arith.constant 0 : i32
    %22 = arith.cmpi ne, %21, %c0_i32_12 : i32
    scf.if %22 {
      %c0_13 = arith.constant 0 : index
      %c0_14 = arith.constant 0 : index
      %23 = vector.load %arg5[%c0_13, %c0_14] : memref<16x128xf32, #tpu.memory_space<vmem>>, vector<16x128xf32>
      %24 = vector.shape_cast %23 : vector<16x128xf32> to vector<2x8x128xf32>
      %cst_15 = arith.constant dense<0.000000e+00> : vector<8x128xf32>
      %25 = vector.multi_reduction <add>, %24, %cst_15 [0] : vector<2x8x128xf32> to vector<8x128xf32>
      %c0_16 = arith.constant 0 : index
      %c0_17 = arith.constant 0 : index
      %26 = vector.load %arg4[%c0_16, %c0_17] : memref<8x128xf32, #tpu.memory_space<vmem>>, vector<8x128xf32>
      tpu.vector_store %arg4[%c0_16, %c0_17], %25 {strides = array<i32>} : memref<8x128xf32, #tpu.memory_space<vmem>>, vector<8x128xf32>,
    } else {
    }
    return
  }
  func.func @transform_0(%arg0: i32, %arg1: i32) -> (i32, i32) {
    %c1_i32 = arith.constant 1 : i32
    %0 = arith.muli %arg0, %c1_i32 : i32
    %1 = arith.addi %0, %arg1 : i32
    %c0_i32 = arith.constant 0 : i32
    %2 = arith.minsi %1, %c0_i32 : i32
    %c0_i32_0 = arith.constant 0 : i32
    %c0_i32_1 = arith.constant 0 : i32
    return %2, %c0_i32_0 : i32, i32
  }
  func.func @transform_1(%arg0: i32, %arg1: i32) -> (i32, i32) {
    %c1_i32 = arith.constant 1 : i32
    %0 = arith.muli %arg0, %c1_i32 : i32
    %1 = arith.addi %0, %arg1 : i32
    %c0_i32 = arith.constant 0 : i32
    %2 = arith.minsi %1, %c0_i32 : i32
    %c0_i32_0 = arith.constant 0 : i32
    %c0_i32_1 = arith.constant 0 : i32
    return %2, %c0_i32_0 : i32, i32
  }
  func.func @transform_2(%arg0: i32, %arg1: i32) -> (i32, i32) {
    %c0_i32 = arith.constant 0 : i32
    %c0_i32_0 = arith.constant 0 : i32
    return %arg0, %c0_i32 : i32, i32
  }
}

</mosaic_0001>

<bundles_post_ra>
// kernel: tpu_custom_call.1
= control target key start
LH: loop header
LB: loop body
LE: loop exit
PB: predicated region body
PF: predicated region fallthrough
CT: control target
= control target key end

     0   :  { %7 = vsyncpa [#allocation4], 0  ;;  %s264_s0 = inlined_call_operand.hbm [shape: f32[16,128], index: 0, kind: input, shape index: {}]   ;;  %s265_s1 = inlined_call_operand.hbm [shape: f32[16,128], index: 1, kind: input, shape index: {}]   ;;  %s266_s2 = inlined_call_operand.hbm [shape: f32[8,128], index: 2, kind: output, shape index: {}]  }
   0x1   :  { %8 = vsyncpa [#allocation7], 0 }
   0x2   :  { %9 = vsyncpa [#allocation5], 0  ;;  %s208_s9 = smov [#allocation3]   ;;  %s136_s13 = scalar_lea.hbm %s264_s0, 256 }
   0x3   :  { %s21_s10 = sshll.u32 %s208_s9, 4  ;;  %p137_p0 = scmp.ne.s32.totalorder %s264_s0, %s136_s13  ;;  %s22_s10 = int_to_ptr.vmem [resolvable:$true] %s21_s10 }
   0x4   :  { %p140_p1 = scmp.lt.u32.totalorder %s136_s13, %s264_s0 }
   0x6   :  { %p142_p2 = pnand %p140_p1, %p137_p0 }
   0x8   :  { %145 = shalt.err (!%p142_p2)
}
   0x9   :  { %s146_s18 = scalar_lea.vmem %s22_s10, 256  ;;  %p151_p4 = scmp.lt.s32.totalorder %s22_s10, %s22_s10 }
   0xa   :  { %p147_p3 = scmp.ne.s32.totalorder %s22_s10, %s146_s18  ;;  %p152_p5 = scmp.lt.s32.totalorder %s146_s18, %s146_s18 }
   0xc   :  { %p153_p6 = por %p152_p5, %p151_p4 }
   0xe   :  { %p154_p7 = pnand %p153_p6, %p147_p3 }
  0x10   :  { %157 = shalt.err (!%p154_p7)
}
  0x11   :  { %s209_s19 = smov 128   ;;  %s210_s20 = smov 8  }
  0x12   :  { %27 = dma.hbm_to_vmem [thread:$0]  %s264_s0, 256, %s22_s10, [#allocation4], %s209_s19, %s209_s19, %s210_s20  }
  0x13   :  { %s211_s23 = smov [#allocation6]   ;;  %s158_s27 = scalar_lea.hbm %s265_s1, 256 }
  0x14   :  { %s39_s24 = sshll.u32 %s211_s23, 4  ;;  %p159_p8 = scmp.ne.s32.totalorder %s265_s1, %s158_s27  ;;  %s40_s24 = int_to_ptr.vmem [resolvable:$true] %s39_s24 }
  0x15   :  { %p162_p9 = scmp.lt.u32.totalorder %s158_s27, %s265_s1 }
  0x17   :  { %p164_p10 = pnand %p162_p9, %p159_p8 }
  0x19   :  { %167 = shalt.err (!%p164_p10)
}
  0x1a   :  { %s168_s4 = scalar_lea.vmem %s40_s24, 256  ;;  %p173_p12 = scmp.lt.s32.totalorder %s40_s24, %s40_s24 }
  0x1b   :  { %p169_p11 = scmp.ne.s32.totalorder %s40_s24, %s168_s4  ;;  %p174_p13 = scmp.lt.s32.totalorder %s168_s4, %s168_s4 }
  0x1d   :  { %p175_p0 = por %p174_p13, %p173_p12 }
  0x1f   :  { %p176_p1 = pnand %p175_p0, %p169_p11 }
  0x21   :  { %179 = shalt.err (!%p176_p1)
}
  0x22   :  { %45 = dma.hbm_to_vmem [thread:$0]  %s265_s1, 256, %s40_s24, [#allocation7], %s209_s19, %s209_s19, %s210_s20  }
  0x23   :  { %202 = dma.done.wait [#allocation4], 256  }
  0x24   :  { %203 = vsyncadd [#allocation4], 4294967040 }
  0x25   :  { %204 = dma.done.wait [#allocation7], 256  }
  0x26   :  { %205 = vsyncadd [#allocation7], 4294967040  ;;  %v66_v0 = vld [vmem:[#allocation3] sm:$0xff]  ;;  %v67_v1 = vld [vmem:[#allocation3 + $0x8] sm:$0xff]  ;;  %s212_s1 = smov [#allocation8]  }
  0x27   :  { %v68_v2 = vld [vmem:[#allocation6] sm:$0xff]  ;;  %v69_v3 = vld [vmem:[#allocation6 + $0x8] sm:$0xff]  ;;  %vm70_vm0 = vcmp.lt.f32.partialorder %v66_v0, 0.0  ;;  %vm71_vm1 = vcmp.lt.f32.partialorder %v67_v1, 0.0  ;;  %s109_s6 = sshll.u32 %s212_s1, 4  ;;  %s110_s6 = int_to_ptr.vmem [resolvable:$true] %s109_s6 }
  0x28   :  { %v80_v4 = vadd.f32 1.0, %v68_v2  ;;  %v72_v5 = vsel %vm70_vm0, 1e-06, %v66_v0  ;;  %v73_v6 = vsel %vm71_vm1, 1e-06, %v67_v1  ;;  %v81_v7 = vadd.f32 1.0, %v69_v3  ;;  %p185_p3 = scmp.lt.s32.totalorder %s110_s6, %s110_s6 }
  0x29   :  { %v74_v8 = vadd.f32 1.0, %v72_v5  ;;  %v75_v9 = vadd.f32 1.0, %v73_v6  ;;  %s180_s7 = scalar_lea.vmem %s110_s6, 128 }
  0x2a   :  { %128 = vlog2.f32 %v80_v4  ;;  %p181_p2 = scmp.ne.s32.totalorder %s110_s6, %s180_s7  ;;  %p186_p4 = scmp.lt.s32.totalorder %s180_s7, %s180_s7 }
  0x2b   :  { %130 = vlog2.f32 %v81_v7 }
  0x2c   :  { %132 = vlog2.f32 %v74_v8  ;;  %p187_p5 = por %p186_p4, %p185_p3 }
  0x2d   :  { %134 = vlog2.f32 %v75_v9 }
  0x2e   :  { %p188_p6 = pnand %p187_p5, %p181_p2 }
  0x34   :  { %v129_v10 = vpop.eup %128 }
  0x35   :  { %v131_v11 = vpop.eup %130  ;;  %v83_v12 = vmul.f32 0.6931472, %v129_v10 }
  0x36   :  { %v133_v13 = vpop.eup %132  ;;  %v85_v14 = vmul.f32 0.6931472, %v131_v11 }
  0x37   :  { %v135_v15 = vpop.eup %134  ;;  %v77_v16 = vmul.f32 0.6931472, %v133_v13 }
  0x38   :  { %v79_v17 = vmul.f32 0.6931472, %v135_v15 }
  0x39   :  { %v86_v18 = vsub.f32 %v77_v16, %v83_v12 }
  0x3a   :  { %v87_v19 = vsub.f32 %v79_v17, %v85_v14 }
  0x3b   :  { %v88_v20 = vmul.f32 %v86_v18, %v86_v18 }
  0x3c   :  { %v89_v21 = vmul.f32 %v87_v19, %v87_v19 }
  0x3e   :  { %v101_v22 = vadd.f32 %v89_v21, %v88_v20 }
  0x40   :  { %102 = vst [vmem:[#allocation8] sm:$0xff] %v101_v22 }
  0x41   :  { %191 = shalt.err (!%p188_p6)
}
  0x42   :  { %s192_s10 = scalar_lea.hbm %s266_s2, 128 }
  0x43   :  { %p193_p7 = scmp.ne.s32.totalorder %s266_s2, %s192_s10  ;;  %p196_p8 = scmp.lt.u32.totalorder %s192_s10, %s266_s2 }
  0x45   :  { %p198_p9 = pnand %p196_p8, %p193_p7 }
  0x47   :  { %201 = shalt.err (!%p198_p9)
}
  0x48   :  { %112 = dma.vmem_to_hbm [thread:$0]  %s110_s6, 128, %s266_s2, [#allocation5]  }
  0x49   :  { %206 = dma.done.wait [#allocation5], 128  }
  0x4a   :  { %207 = vsyncadd [#allocation5], 4294967168 }
  0x4b   :  { %116 = vsyncpa [#allocation4], 1 }
  0x4c   :  { %117 = vsyncpa [#allocation7], 1 }
  0x4d   :  { %118 = vsyncpa [#allocation5], 1 }

</bundles_post_ra>
